<compile_context>
chip_gen: v6e
topology: v6e:2x2x1
jax: 0.10.0
libtpu: 0.0.40
codegen_flags: <defaults>
</compile_context>

<pallas_src>
import jax
import jax.numpy as jnp
from jax import lax
from jax.experimental import pallas as pl
from jax.experimental.pallas import tpu as pltpu


def _regnn_kernel(x_ref, w1t_ref, b1_ref, w2t_ref, b2_ref, o_ref):
    # Layer 1 (sigmoid constants folded into weights):
    #   t (64, TB) = tanh(0.5*w1^T @ x^T + 0.5*b1)
    # Contract dim 1 of w1t' (64, 11) with dim 1 of the (TB, 11) x tile so the
    # batch rides the lane axis; Mosaic performs the layout flip in-kernel.
    t = jnp.tanh(
        lax.dot_general(
            w1t_ref[...],
            x_ref[...],
            dimension_numbers=(((1,), (1,)), ((), ())),
            preferred_element_type=jnp.float32,
        )
        + b1_ref[...]
    )
    # Layer 2: (1, 64) @ (64, TB) -> (1, TB); folded bias + full sigmoid only
    # touch a single lane-dense row.
    y = jnp.dot(w2t_ref[...], t, preferred_element_type=jnp.float32) + b2_ref[0, 0]
    o_ref[...] = 0.5 * jnp.tanh(0.5 * y) + 0.5


def _round_up(n, m):
    return ((n + m - 1) // m) * m


def regnn_forward(x, w1, b1, w2, b2, *, tb=8192):
    """x: (B, 11) f32. w1: (11,64), b1: (1,64), w2: (64,1), b2: (1,1).
    Returns (B,) f32 -- same semantics as RegNN.forward."""
    B = x.shape[0]
    x = x.astype(jnp.float32)

    # Tile must be a multiple of 128 (batch sits on the lane axis).  Clamp so
    # large batches split into >= 2 tiles (v7x dual TensorCore), and tiny
    # batches don't over-pad.
    tb = max(128, min(tb, _round_up(pl.cdiv(B, 2), 128)))
    num_tiles = pl.cdiv(B, tb)

    # One-time tiny weight prep: fold sigmoid(z) = 0.5*tanh(0.5*z) + 0.5 into
    # the 11x64 / 64x1 weights (NOT the big input -- that would be the
    # pre-scale anti-pattern).
    w1t = (0.5 * w1.T).astype(jnp.float32)                                # (64, 11)
    b1c = (0.5 * b1).reshape(64, 1).astype(jnp.float32)                   # (64, 1)
    w2t = (0.5 * w2.T).astype(jnp.float32)                                # (1, 64)
    b2s = (b2.reshape(1, 1) + 0.5 * jnp.sum(w2)).astype(jnp.float32)      # (1, 1)

    out = pl.pallas_call(
        _regnn_kernel,
        out_shape=jax.ShapeDtypeStruct((1, B), jnp.float32),
        grid=(num_tiles,),
        in_specs=[
            pl.BlockSpec((tb, 11), lambda i: (i, 0)),    # x tile, straight from HBM
            pl.BlockSpec((64, 11), lambda i: (0, 0)),    # 0.5*w1^T, VMEM-resident
            pl.BlockSpec((64, 1), lambda i: (0, 0)),     # 0.5*b1 column, resident
            pl.BlockSpec((1, 64), lambda i: (0, 0)),     # 0.5*w2^T, resident
            pl.BlockSpec(memory_space=pltpu.MemorySpace.SMEM),  # folded b2 scalar
        ],
        out_specs=pl.BlockSpec((1, tb), lambda i: (0, i)),  # lane-dense output
        compiler_params=pltpu.CompilerParams(
            dimension_semantics=("parallel",),
        ),
    )(x, w1t, b1c, w2t, b2s)

    # view(-1); no padding was materialized, so nothing to slice off.
    return out.reshape(-1)


def init_params(key):
    """Mimic PyTorch nn.Linear default init: U(-1/sqrt(fan_in), 1/sqrt(fan_in))."""
    k1, k2, k3, k4 = jax.random.split(key, 4)
    bound1 = 1.0 / jnp.sqrt(11.0)
    bound2 = 1.0 / jnp.sqrt(64.0)
    # stored as (in_features, out_features), i.e. PyTorch weight transposed
    w1 = jax.random.uniform(k1, (11, 64), jnp.float32, -bound1, bound1)
    b1 = jax.random.uniform(k2, (1, 64), jnp.float32, -bound1, bound1)
    w2 = jax.random.uniform(k3, (64, 1), jnp.float32, -bound2, bound2)
    b2 = jax.random.uniform(k4, (1, 1), jnp.float32, -bound2, bound2)
    return w1, b1, w2, b2


def reference_forward(x, w1, b1, w2, b2):
    h = jax.nn.sigmoid(x @ w1 + b1)
    y = jax.nn.sigmoid(h @ w2 + b2)
    return y.reshape(-1)


if __name__ == "__main__":
    key = jax.random.PRNGKey(0)
    kx1, kx2, kp = jax.random.split(key, 3)
    w1, b1, w2, b2 = init_params(kp)

    # Small batch: single (fully partial) tile, exercises masked edge handling.
    B1 = 8
    x1 = jax.random.normal(kx1, (B1, 11), jnp.float32)
    out1 = jax.block_until_ready(regnn_forward(x1, w1, b1, w2, b2))
    ref1 = reference_forward(x1, w1, b1, w2, b2)
    assert out1.shape == (B1,)
    assert jnp.allclose(out1, ref1, atol=1e-5, rtol=1e-5)

    # Non-multiple-of-tile batch: multi-step grid with a partial last block
    # (undefined input pad rows must not leak into kept output lanes).
    B2 = 300
    x2 = jax.random.normal(kx2, (B2, 11), jnp.float32)
    out2 = jax.block_until_ready(regnn_forward(x2, w1, b1, w2, b2))
    ref2 = reference_forward(x2, w1, b1, w2, b2)
    assert out2.shape == (B2,)
    assert jnp.allclose(out2, ref2, atol=1e-5, rtol=1e-5)

    print("KERNEL_OK")
</pallas_src>

<mosaic_0001>
module attributes {stable_mosaic.version = 11 : i64} {
  func.func @_regnn_kernel(%arg0: i32, %arg1: memref<128x11xf32, #tpu.memory_space<vmem>>, %arg2: memref<64x11xf32, #tpu.memory_space<vmem>>, %arg3: memref<64x1xf32, #tpu.memory_space<vmem>>, %arg4: memref<1x64xf32, #tpu.memory_space<vmem>>, %arg5: memref<1x1xf32, #tpu.memory_space<smem>>, %arg6: memref<1x128xf32, #tpu.memory_space<vmem>>) attributes {dimension_semantics = [#tpu.dimension_semantics<parallel>], iteration_bounds = array<i64: 1>, scalar_prefetch = 0 : i64, scratch_operands = 0 : i64, tpu.core_type = #tpu.core_type<tc>, window_params = [{transform_indices = @transform_0, window_bounds = array<i64: 128, 11>}, {pipeline_mode = #tpu.pipeline_mode<synchronous>, transform_indices = @transform_1, window_bounds = array<i64: 64, 11>}, {pipeline_mode = #tpu.pipeline_mode<synchronous>, transform_indices = @transform_2, window_bounds = array<i64: 64, 1>}, {pipeline_mode = #tpu.pipeline_mode<synchronous>, transform_indices = @transform_3, window_bounds = array<i64: 1, 64>}, {transform_indices = @transform_4, window_bounds = array<i64: 1, 1>}, {transform_indices = @transform_5, window_bounds = array<i64: 1, 128>}]} {
    %c0 = arith.constant 0 : index
    %c0_0 = arith.constant 0 : index
    %0 = vector.load %arg2[%c0, %c0_0] : memref<64x11xf32, #tpu.memory_space<vmem>>, vector<64x11xf32>
    %c0_1 = arith.constant 0 : index
    %c0_2 = arith.constant 0 : index
    %1 = vector.load %arg1[%c0_1, %c0_2] : memref<128x11xf32, #tpu.memory_space<vmem>>, vector<128x11xf32>
    %cst = arith.constant dense<0.000000e+00> : vector<64x128xf32>
    %2 = tpu.matmul %0, %1, %cst {dimension_numbers = #tpu.dot_dimension_numbers<[1], [1], [0], [0], [0, 0, 1, 0], [], []>} : vector<64x11xf32>, vector<128x11xf32>, vector<64x128xf32> -> vector<64x128xf32>
    %c0_3 = arith.constant 0 : index
    %c0_4 = arith.constant 0 : index
    %3 = vector.load %arg3[%c0_3, %c0_4] : memref<64x1xf32, #tpu.memory_space<vmem>>, vector<64x1xf32>
    %4 = vector.broadcast %3 : vector<64x1xf32> to vector<64x128xf32>
    %5 = arith.addf %2, %4 : vector<64x128xf32>
    %6 = math.tanh %5 : vector<64x128xf32>
    %c0_5 = arith.constant 0 : index
    %c0_6 = arith.constant 0 : index
    %7 = vector.load %arg4[%c0_5, %c0_6] : memref<1x64xf32, #tpu.memory_space<vmem>>, vector<1x64xf32>
    %cst_7 = arith.constant dense<0.000000e+00> : vector<1x128xf32>
    %8 = tpu.matmul %7, %6, %cst_7 {dimension_numbers = #tpu.dot_dimension_numbers<[1], [0], [0], [1], [0, 0, 1, 1], [], []>} : vector<1x64xf32>, vector<64x128xf32>, vector<1x128xf32> -> vector<1x128xf32>
    %c0_8 = arith.constant 0 : index
    %c0_9 = arith.constant 0 : index
    %9 = memref.load %arg5[%c0_8, %c0_9] : memref<1x1xf32, #tpu.memory_space<smem>>
    %10 = vector.broadcast %9 : f32 to vector<1x128xf32>
    %11 = arith.addf %8, %10 : vector<1x128xf32>
    %cst_10 = arith.constant 5.000000e-01 : f32
    %12 = vector.broadcast %cst_10 : f32 to vector<1x128xf32>
    %13 = arith.mulf %12, %11 : vector<1x128xf32>
    %14 = math.tanh %13 : vector<1x128xf32>
    %cst_11 = arith.constant 5.000000e-01 : f32
    %15 = vector.broadcast %cst_11 : f32 to vector<1x128xf32>
    %16 = arith.mulf %15, %14 : vector<1x128xf32>
    %cst_12 = arith.constant 5.000000e-01 : f32
    %17 = vector.broadcast %cst_12 : f32 to vector<1x128xf32>
    %18 = arith.addf %16, %17 : vector<1x128xf32>
    %c0_13 = arith.constant 0 : index
    %c0_14 = arith.constant 0 : index
    %19 = vector.load %arg6[%c0_13, %c0_14] : memref<1x128xf32, #tpu.memory_space<vmem>>, vector<1x128xf32>
    tpu.vector_store %arg6[%c0_13, %c0_14], %18 {strides = array<i32>} : memref<1x128xf32, #tpu.memory_space<vmem>>, vector<1x128xf32>,
    return
  }
  func.func @transform_0(%arg0: i32) -> (i32, i32) {
    %c0_i32 = arith.constant 0 : i32
    %c0_i32_0 = arith.constant 0 : i32
    return %arg0, %c0_i32 : i32, i32
  }
  func.func @transform_1(%arg0: i32) -> (i32, i32) {
    %c0_i32 = arith.constant 0 : i32
    %c0_i32_0 = arith.constant 0 : i32
    %c0_i32_1 = arith.constant 0 : i32
    return %c0_i32, %c0_i32_0 : i32, i32
  }
  func.func @transform_2(%arg0: i32) -> (i32, i32) {
    %c0_i32 = arith.constant 0 : i32
    %c0_i32_0 = arith.constant 0 : i32
    %c0_i32_1 = arith.constant 0 : i32
    return %c0_i32, %c0_i32_0 : i32, i32
  }
  func.func @transform_3(%arg0: i32) -> (i32, i32) {
    %c0_i32 = arith.constant 0 : i32
    %c0_i32_0 = arith.constant 0 : i32
    %c0_i32_1 = arith.constant 0 : i32
    return %c0_i32, %c0_i32_0 : i32, i32
  }
  func.func @transform_4(%arg0: i32) -> (i32, i32) {
    %c0_i32 = arith.constant 0 : i32
    %c0_i32_0 = arith.constant 0 : i32
    %c0_i32_1 = arith.constant 0 : i32
    return %c0_i32, %c0_i32_0 : i32, i32
  }
  func.func @transform_5(%arg0: i32) -> (i32, i32) {
    %c0_i32 = arith.constant 0 : i32
    %c0_i32_0 = arith.constant 0 : i32
    return %c0_i32, %arg0 : i32, i32
  }
}

</mosaic_0001>

<bundles_post_ra>
// kernel: tpu_custom_call.1
= control target key start
LH: loop header
LB: loop body
LE: loop exit
PB: predicated region body
PF: predicated region fallthrough
CT: control target
= control target key end

     0   :  { %vm94_vm0 = vcmask 89088   ;;  %v543_v2 = vmov 0   ;;  %s722_s0 = inlined_call_operand.vmem [shape: f32[8,11], index: 0, kind: input, shape index: {}]   ;;  %s723_s1 = inlined_call_operand.vmem [shape: f32[64,11], index: 1, kind: input, shape index: {}]   ;;  %s724_s2 = inlined_call_operand.vmem [shape: f32[64,1], index: 2, kind: input, shape index: {}]   ;;  %s725_s3 = inlined_call_operand.vmem [shape: f32[1,64], index: 3, kind: input, shape index: {}]   ;;  %s726_s4 = inlined_call_operand.<no memory space> [shape: f32[1,1], index: 4, kind: input, shape index: {}]   ;;  %s727_s5 = inlined_call_operand.hbm [shape: f32[1,8], index: 5, kind: output, shape index: {}]  }
   0x1   :  { %v45_v0 = vld [vmem:[%s722_s0 + $0x78] sm:$0xff]  ;;  %v44_v1 = vld [vmem:[%s722_s0 + $0x70] sm:$0xff]  ;;  %501 = vset.pattern.permute.xlu0 %v543_v2  ;;  %502 = vset.pattern.permute.xlu1 %v543_v2  ;;  %v43_v3 = vld [vmem:[%s722_s0 + $0x68] sm:$0xff] }
   0x2   :  { %434 = vmatprep.subr.msk.mxu0 %vm94_vm0, %v45_v0  ;;  %v22_v4 = vld [vmem:[%s723_s1] sm:$0xff]  ;;  %v53_v6 = vld [vmem:[%s724_s2 + $0x38] sm:$0xff]  ;;  %v51_v7 = vld [vmem:[%s724_s2 + $0x28] sm:$0xff] }
   0x3   :  { %435 = vmatpush3.xpose.msk.msra.mxu0 %vm94_vm0, %v45_v0  ;;  %466 = vmatprep.mubr.msk.f32.mxu0 %vm94_vm0, %v22_v4  ;;  %v42_v5 = vld [vmem:[%s722_s0 + $0x60] sm:$0xff]  ;;  %v52_v8 = vld [vmem:[%s724_s2 + $0x30] sm:$0xff] }
   0x4   :  { %436 = vmatprep.subr.msk.mxu0 %vm94_vm0, %v44_v1  ;;  %91 = vperm.xlu0 %501, %v53_v6   ;;  %v50_v9 = vld [vmem:[%s724_s2 + $0x20] sm:$0xff] }
   0x5   :  { %81 = vperm.xlu1 %502, %v51_v7  }
   0x7   :  { %437 = vmatpush3.xpose.msk.msra.mxu0 %vm94_vm0, %v44_v1 }
   0x8   :  { %438 = vmatprep.subr.msk.mxu0 %vm94_vm0, %v43_v3 }
   0xb   :  { %439 = vmatpush3.xpose.msk.msra.mxu0 %vm94_vm0, %v43_v3 }
   0xc   :  { %11 = vsyncpa [#allocation4], 0  ;;  %440 = vmatprep.subr.msk.mxu0 %vm94_vm0, %v42_v5  ;;  %v41_v10 = vld [vmem:[%s722_s0 + $0x58] sm:$0xff]  ;;  %86 = vperm.xlu0 %501, %v52_v8   ;;  %v48_v12 = vld [vmem:[%s724_s2 + $0x10] sm:$0xff]  ;;  %v544_v33 = vmov 0.0   ;;  %vm545_vm1 = vmmov 0   ;;  %v282_v3 = vstv %s726_s4 }
   0xd   :  { %76 = vperm.xlu1 %502, %v50_v9   ;;  %v49_v11 = vld [vmem:[%s724_s2 + $0x18] sm:$0xff]  ;;  %v40_v13 = vld [vmem:[%s722_s0 + $0x50] sm:$0xff]  ;;  %v47_v14 = vld [vmem:[%s724_s2 + $0x8] sm:$0xff]  ;;  %478 = vmatprep.subr.mxu1 %v544_v33  ;;  %vm283_vm2 = vcmask 523264   ;;  %s546_s7 = smov [#allocation3]  }
   0xe   :  { %v46_v15 = vld [vmem:[%s724_s2] sm:$0xff]  ;;  %v39_v16 = vld [vmem:[%s722_s0 + $0x48] sm:$0xff]  ;;  %v37_v18 = vld [vmem:[%s722_s0 + $0x38] sm:$0xff]  ;;  %494 = vmatprep.mubr.msk.f32.mxu1 %vm545_vm1, %v544_v33  ;;  %s368_s8 = sshll.u32 %s546_s7, 4  ;;  %s369_s8 = int_to_ptr.vmem [resolvable:$true] %s368_s8 }
   0xf   :  { %441 = vmatpush3.xpose.msk.msra.mxu0 %vm94_vm0, %v42_v5  ;;  %v38_v17 = vld [vmem:[%s722_s0 + $0x40] sm:$0xff]  ;;  %v36_v19 = vld [vmem:[%s722_s0 + $0x30] sm:$0xff]  ;;  %v35_v20 = vld [vmem:[%s722_s0 + $0x28] sm:$0xff]  ;;  %s525_s9 = scalar_lea.vmem %s369_s8, 32  ;;  %p526_p1 = scmp.lt.s32.totalorder %s369_s8, %s369_s8 }
  0x10   :  { %442 = vmatprep.subr.msk.mxu0 %vm94_vm0, %v41_v10  ;;  %71 = vperm.xlu0 %501, %v49_v11   ;;  %v34_v21 = vld [vmem:[%s722_s0 + $0x20] sm:$0xff]  ;;  %v33_v22 = vld [vmem:[%s722_s0 + $0x18] sm:$0xff]  ;;  %v32_v23 = vld [vmem:[%s722_s0 + $0x10] sm:$0xff] }
  0x11   :  { %66 = vperm.xlu1 %502, %v48_v12   ;;  %v31_v24 = vld [vmem:[%s722_s0 + $0x8] sm:$0xff]  ;;  %v30_v25 = vld [vmem:[%s722_s0] sm:$0xff]  ;;  %v24_v27 = vld [vmem:[%s723_s1 + $0x10] sm:$0xff] }
  0x12   :  { %v23_v26 = vld [vmem:[%s723_s1 + $0x8] sm:$0xff]  ;;  %v25_v28 = vld [vmem:[%s723_s1 + $0x18] sm:$0xff]  ;;  %v26_v29 = vld [vmem:[%s723_s1 + $0x20] sm:$0xff] }
  0x13   :  { %443 = vmatpush3.xpose.msk.msra.mxu0 %vm94_vm0, %v41_v10  ;;  %v27_v30 = vld [vmem:[%s723_s1 + $0x28] sm:$0xff]  ;;  %v28_v31 = vld [vmem:[%s723_s1 + $0x30] sm:$0xff]  ;;  %v29_v32 = vld [vmem:[%s723_s1 + $0x38] sm:$0xff] }
  0x14   :  { %444 = vmatprep.subr.msk.mxu0 %vm94_vm0, %v40_v13  ;;  %61 = vperm.xlu0 %501, %v47_v14   ;;  %v280_v1 = vld [vmem:[%s725_s3] sm:$0x1]  ;;  %s521_s3 = scalar_lea.vmem %s369_s8, 16 }
  0x15   :  { %56 = vperm.xlu1 %502, %v46_v15   ;;  %p522_p0 = scmp.ne.s32.totalorder %s369_s8, %s521_s3  ;;  %p527_p2 = scmp.lt.s32.totalorder %s525_s9, %s521_s3 }
  0x17   :  { %445 = vmatpush3.xpose.msk.msra.mxu0 %vm94_vm0, %v40_v13  ;;  %p528_p3 = por %p527_p2, %p526_p1 }
  0x18   :  { %446 = vmatprep.subr.msk.mxu0 %vm94_vm0, %v39_v16 }
  0x19   :  { %p529_p4 = pnand %p528_p3, %p522_p0 }
  0x1b   :  { %447 = vmatpush3.xpose.msk.msra.mxu0 %vm94_vm0, %v39_v16 }
  0x1c   :  { %448 = vmatprep.subr.msk.mxu0 %vm94_vm0, %v38_v17 }
  0x1f   :  { %449 = vmatpush3.xpose.msk.msra.mxu0 %vm94_vm0, %v38_v17 }
  0x20   :  { %450 = vmatprep.subr.msk.mxu0 %vm94_vm0, %v37_v18 }
  0x23   :  { %451 = vmatpush3.xpose.msk.msra.mxu0 %vm94_vm0, %v37_v18 }
  0x24   :  { %452 = vmatprep.subr.msk.mxu0 %vm94_vm0, %v36_v19 }
  0x27   :  { %453 = vmatpush3.xpose.msk.msra.mxu0 %vm94_vm0, %v36_v19 }
  0x28   :  { %454 = vmatprep.subr.msk.mxu0 %vm94_vm0, %v35_v20 }
  0x2b   :  { %455 = vmatpush3.xpose.msk.msra.mxu0 %vm94_vm0, %v35_v20 }
  0x2c   :  { %456 = vmatprep.subr.msk.mxu0 %vm94_vm0, %v34_v21 }
  0x2f   :  { %457 = vmatpush3.xpose.msk.msra.mxu0 %vm94_vm0, %v34_v21 }
  0x30   :  { %458 = vmatprep.subr.msk.mxu0 %vm94_vm0, %v33_v22 }
  0x33   :  { %459 = vmatpush3.xpose.msk.msra.mxu0 %vm94_vm0, %v33_v22 }
  0x34   :  { %460 = vmatprep.subr.msk.mxu0 %vm94_vm0, %v32_v23 }
  0x37   :  { %461 = vmatpush3.xpose.msk.msra.mxu0 %vm94_vm0, %v32_v23 }
  0x38   :  { %462 = vmatprep.subr.msk.mxu0 %vm94_vm0, %v31_v24 }
  0x3b   :  { %463 = vmatpush3.xpose.msk.msra.mxu0 %vm94_vm0, %v31_v24 }
  0x3c   :  { %464 = vmatprep.subr.msk.mxu0 %vm94_vm0, %v30_v25 }
  0x3f   :  { %465 = vmatpush3.xpose.msk.msra.mxu0 %vm94_vm0, %v30_v25 }
  0x42   :  { %467 = vmatmul.mubr.msk.f32.vlgmr.msra.gmra.mxu0 %vm94_vm0, %v23_v26 }
  0x43   :  { %469 = vmatprep.mubr.msk.f32.mxu0 %vm94_vm0, %v24_v27 }
  0x46   :  { %470 = vmatmul.mubr.msk.f32.gmra.mxu0 %vm94_vm0, %v25_v28 }
  0x47   :  { %472 = vmatprep.mubr.msk.f32.mxu0 %vm94_vm0, %v26_v29 }
  0x4a   :  { %473 = vmatmul.mubr.msk.f32.gmra.mxu0 %vm94_vm0, %v27_v30 }
  0x4b   :  { %475 = vmatprep.mubr.msk.f32.mxu0 %vm94_vm0, %v28_v31 }
  0x4e   :  { %476 = vmatmul.mubr.msk.f32.gmra.mxu0 %vm94_vm0, %v29_v32 }
  0x7f   :  { %v92_v35 = vpop.permute.xlu0 %91 }
  0x80   :  { %v82_v37 = vpop.permute.xlu1 %81 }
  0x87   :  { %v87_v40 = vpop.permute.xlu0 %86 }
  0x88   :  { %v77_v42 = vpop.permute.xlu1 %76 }
  0x8b   :  { %v72_v46 = vpop.permute.xlu0 %71 }
  0x8c   :  { %v67_v50 = vpop.permute.xlu1 %66 }
  0x8f   :  { %v62_v53 = vpop.permute.xlu0 %61 }
  0x90   :  { %v57_v55 = vpop.permute.xlu1 %56 }
 0x102   :  { %v468_v34 = vpop.f32.mrf.mxu0 }
 0x103   :  { %v239_v56 = vadd.f32 %v468_v34, %v62_v53 }
 0x104   :  { %v233_v36 = vpop.f32.mrf.mxu0 }
 0x105   :  { %v234_v57 = vadd.f32 %v233_v36, %v57_v55 }
 0x106   :  { %v471_v38 = vpop.f32.mrf.mxu0 }
 0x107   :  { %v249_v52 = vadd.f32 %v471_v38, %v72_v46 }
 0x108   :  { %v243_v39 = vpop.f32.mrf.mxu0 }
 0x109   :  { %v244_v54 = vadd.f32 %v243_v39, %v67_v50 }
 0x10a   :  { %v474_v41 = vpop.f32.mrf.mxu0 }
 0x10b   :  { %v259_v48 = vadd.f32 %v474_v41, %v82_v37 }
 0x10c   :  { %v253_v43 = vpop.f32.mrf.mxu0 }
 0x10d   :  { %v254_v51 = vadd.f32 %v253_v43, %v77_v42 }
 0x10e   :  { %v477_v44 = vpop.f32.mrf.mxu0 }
 0x10f   :  { %v269_v45 = vadd.f32 %v477_v44, %v92_v35 }
 0x110   :  { %v263_v47 = vpop.f32.mrf.mxu0 }
 0x111   :  { %503 = vtanh.f32 %v269_v45  ;;  %v264_v49 = vadd.f32 %v263_v47, %v87_v40 }
 0x113   :  { %505 = vtanh.f32 %v264_v49 }
 0x114   :  { %507 = vtanh.f32 %v259_v48 }
 0x115   :  { %509 = vtanh.f32 %v254_v51 }
 0x116   :  { %511 = vtanh.f32 %v249_v52 }
 0x117   :  { %513 = vtanh.f32 %v244_v54 }
 0x118   :  { %515 = vtanh.f32 %v239_v56 }
 0x119   :  { %517 = vtanh.f32 %v234_v57 }
 0x11e   :  { %v504_v58 = vpop.eup %503 }
 0x11f   :  { %479 = vmatpush3.msra.mxu1 %v504_v58 }
 0x120   :  { %v506_v59 = vpop.eup %505  ;;  %480 = vmatprep.subr.mxu1 %v544_v33 }
 0x121   :  { %481 = vmatpush3.msra.mxu1 %v506_v59  ;;  %v508_v60 = vpop.eup %507 }
 0x122   :  { %482 = vmatprep.subr.mxu1 %v544_v33  ;;  %v510_v61 = vpop.eup %509 }
 0x123   :  { %483 = vmatpush3.msra.mxu1 %v508_v60  ;;  %v512_v62 = vpop.eup %511 }
 0x124   :  { %484 = vmatprep.subr.mxu1 %v544_v33  ;;  %v514_v63 = vpop.eup %513 }
 0x125   :  { %485 = vmatpush3.msra.mxu1 %v510_v61  ;;  %v516_v0 = vpop.eup %515 }
 0x126   :  { %486 = vmatprep.subr.mxu1 %v544_v33  ;;  %v518_v2 = vpop.eup %517 }
 0x127   :  { %487 = vmatpush3.msra.mxu1 %v512_v62 }
 0x128   :  { %488 = vmatprep.subr.mxu1 %v544_v33 }
 0x129   :  { %489 = vmatpush3.msra.mxu1 %v514_v63 }
 0x12a   :  { %490 = vmatprep.subr.mxu1 %v544_v33 }
 0x12b   :  { %491 = vmatpush3.msra.mxu1 %v516_v0 }
 0x12c   :  { %492 = vmatprep.subr.mxu1 %v544_v33 }
 0x12d   :  { %493 = vmatpush3.msra.mxu1 %v518_v2 }
 0x12e   :  { %495 = vmatmul.mubr.msk.f32.vlgmr.msra.gmra.mxu1 %vm283_vm2, %v280_v1 }
 0x1ee   :  { %v353_v4 = vpop.f32.mrf.mxu1 }
 0x1ef   :  { %v354_v5 = vadd.f32 %v353_v4, %v282_v3 }
 0x1f0   :  { %v496_v6 = vpop.f32.mrf.mxu1 }
 0x1f1   :  { %v357_v7 = vmul.f32 0.5, %v354_v5 }
 0x1f3   :  { %519 = vtanh.f32 %v357_v7 }
 0x200   :  { %v520_v8 = vpop.eup %519 }
 0x201   :  { %v359_v9 = vmul.f32 0.5, %v520_v8 }
 0x203   :  { %v360_v10 = vadd.f32 0.5, %v359_v9 }
 0x205   :  { %361 = vst [vmem:[#allocation3] sm:$0x1] %v360_v10 }
 0x206   :  { %532 = shalt.err (!%p529_p4)
}
 0x207   :  { %371 = dma.vmem_to_hbm [thread:$0]  %s369_s8, 16, %s727_s5, [#allocation4]  }
 0x208   :  { %541 = dma.done.wait [#allocation4], 16  }
 0x209   :  { %542 = vsyncadd [#allocation4], 4294967280 }
 0x20a   :  { %375 = vsyncpa [#allocation4], 1 }

</bundles_post_ra>
